<compile_context>
chip_gen: v5e
topology: v5e:2x2
jax: 0.10.0
libtpu: 0.0.40
codegen_flags: <defaults>
</compile_context>

<pallas_src>
import functools

import jax
import jax.numpy as jnp
from jax.experimental import pallas as pl
from jax.experimental.pallas import tpu as pltpu

_LANES = 128
_SUBLANES = 8


# ----------------------------------------------------------------------------
# Kernels
# ----------------------------------------------------------------------------
def _l2_loss_kernel_masked(flow_ref, pred_ref, mask_ref, err_acc_ref, mask_acc_ref):
    t = pl.program_id(1)

    # New batch block starts at t == 0: zero its accumulators.
    @pl.when(t == 0)
    def _():
        err_acc_ref[...] = jnp.zeros_like(err_acc_ref)
        mask_acc_ref[...] = jnp.zeros_like(mask_acc_ref)

    f = flow_ref[0].astype(jnp.float32)          # (C, R, 128)
    p = pred_ref[0].astype(jnp.float32)          # (C, R, 128)
    diff = f - p
    err = jnp.sqrt(jnp.sum(diff * diff, axis=0))  # (R, 128), lane/sublane dense
    m = mask_ref[0].astype(jnp.float32)           # (R, 128)
    err = err * m

    # Fold R -> 8 with sublane-aligned VPU adds; keep accumulator (1, 8, 128).
    err_acc_ref[...] += jnp.sum(err.reshape(1, -1, _SUBLANES, _LANES), axis=1)
    mask_acc_ref[...] += jnp.sum(m.reshape(1, -1, _SUBLANES, _LANES), axis=1)


def _l2_loss_kernel_nomask(flow_ref, pred_ref, err_acc_ref):
    t = pl.program_id(1)

    @pl.when(t == 0)
    def _():
        err_acc_ref[...] = jnp.zeros_like(err_acc_ref)

    f = flow_ref[0].astype(jnp.float32)           # (C, R, 128)
    p = pred_ref[0].astype(jnp.float32)           # (C, R, 128)
    diff = f - p
    err = jnp.sqrt(jnp.sum(diff * diff, axis=0))  # (R, 128)

    err_acc_ref[...] += jnp.sum(err.reshape(1, -1, _SUBLANES, _LANES), axis=1)


# ----------------------------------------------------------------------------
# Tiling helpers
# ----------------------------------------------------------------------------
def _choose_tile_rows(hw, num_channels, r_target=512, vmem_budget_bytes=8 << 20):
    """Pick rows-per-tile R (multiple of 8) and tiles-per-image T."""
    rows = -(-hw // _LANES)  # ceil(HW / 128)
    # Budget: double-buffered f32 inputs (2*C for flow/pred, +1 for mask).
    r_vmem = vmem_budget_bytes // (2 * (2 * num_channels + 1) * _LANES * 4)
    rows_up = ((rows + _SUBLANES - 1) // _SUBLANES) * _SUBLANES
    r = max(_SUBLANES, min(r_target, r_vmem, rows_up))
    r = (r // _SUBLANES) * _SUBLANES
    t = -(-rows // r)
    return r, t


def _fold_spatial(x, padded_rows):
    """(..., HW) -> zero-pad to padded_rows*128 and reshape to (..., padded_rows, 128).

    Zero padding is exact for both paths: padded positions give diff == 0
    (err == 0) and mask == 0.
    """
    hw = x.shape[-1]
    pad = padded_rows * _LANES - hw
    if pad:
        pad_width = [(0, 0)] * (x.ndim - 1) + [(0, pad)]
        x = jnp.pad(x, pad_width)
    return x.reshape(*x.shape[:-1], padded_rows, _LANES)


# ----------------------------------------------------------------------------
# pallas_call wrappers
# ----------------------------------------------------------------------------
def _l2_sums_masked(flow, pred, mask, r, t):
    """flow/pred: (B, C, rows, 128), mask: (B, rows, 128) -> two (B, 8, 128) partials."""
    b, c, rows, _ = flow.shape
    nelem = b * rows * _LANES
    bytes_accessed = (2 * c * flow.dtype.itemsize + mask.dtype.itemsize) * nelem
    cost = pl.CostEstimate(
        flops=nelem * (3 * c + 2), transcendentals=nelem, bytes_accessed=bytes_accessed
    )

    grid_spec = pltpu.PrefetchScalarGridSpec(
        num_scalar_prefetch=0,
        grid=(b, t),
        in_specs=[
            pl.BlockSpec((1, c, r, _LANES), lambda bi, ti: (bi, 0, ti, 0)),
            pl.BlockSpec((1, c, r, _LANES), lambda bi, ti: (bi, 0, ti, 0)),
            pl.BlockSpec((1, r, _LANES), lambda bi, ti: (bi, ti, 0)),
        ],
        out_specs=[
            pl.BlockSpec((1, _SUBLANES, _LANES), lambda bi, ti: (bi, 0, 0)),
            pl.BlockSpec((1, _SUBLANES, _LANES), lambda bi, ti: (bi, 0, 0)),
        ],
    )

    err_acc, mask_acc = pl.pallas_call(
        _l2_loss_kernel_masked,
        out_shape=(
            jax.ShapeDtypeStruct((b, _SUBLANES, _LANES), jnp.float32),
            jax.ShapeDtypeStruct((b, _SUBLANES, _LANES), jnp.float32),
        ),
        grid_spec=grid_spec,
        compiler_params=pltpu.CompilerParams(
            dimension_semantics=("parallel", "arbitrary"),
        ),
        cost_estimate=cost,
    )(flow, pred, mask)
    return err_acc, mask_acc


def _l2_sums_nomask(flow, pred, r, t):
    """flow/pred: (B, C, rows, 128) -> (B, 8, 128) partial error sums."""
    b, c, rows, _ = flow.shape
    nelem = b * rows * _LANES
    bytes_accessed = 2 * c * flow.dtype.itemsize * nelem
    cost = pl.CostEstimate(
        flops=nelem * (3 * c + 1), transcendentals=nelem, bytes_accessed=bytes_accessed
    )

    grid_spec = pltpu.PrefetchScalarGridSpec(
        num_scalar_prefetch=0,
        grid=(b, t),
        in_specs=[
            pl.BlockSpec((1, c, r, _LANES), lambda bi, ti: (bi, 0, ti, 0)),
            pl.BlockSpec((1, c, r, _LANES), lambda bi, ti: (bi, 0, ti, 0)),
        ],
        out_specs=[
            pl.BlockSpec((1, _SUBLANES, _LANES), lambda bi, ti: (bi, 0, 0)),
        ],
    )

    (err_acc,) = pl.pallas_call(
        _l2_loss_kernel_nomask,
        out_shape=(jax.ShapeDtypeStruct((b, _SUBLANES, _LANES), jnp.float32),),
        grid_spec=grid_spec,
        compiler_params=pltpu.CompilerParams(
            dimension_semantics=("parallel", "arbitrary"),
        ),
        cost_estimate=cost,
    )(flow, pred)
    return err_acc


# ----------------------------------------------------------------------------
# Public API (matches MyL2Loss.forward)
# ----------------------------------------------------------------------------
@functools.partial(jax.jit, static_argnames=("has_mask",))
def _my_l2_loss_impl(flow, flow_pred, mask, has_mask):
    b, c, h, w = flow.shape
    hw = h * w
    r, t = _choose_tile_rows(hw, c)
    padded_rows = r * t

    flow_f = _fold_spatial(flow.reshape(b, c, hw), padded_rows)
    pred_f = _fold_spatial(flow_pred.reshape(b, c, hw), padded_rows)

    if has_mask:
        mask_f = _fold_spatial(mask.reshape(b, hw), padded_rows)
        err_acc, mask_acc = _l2_sums_masked(flow_f, pred_f, mask_f, r, t)
        return jnp.sum(err_acc) / (jnp.sum(mask_acc) + 1e-20)
    else:
        err_acc = _l2_sums_nomask(flow_f, pred_f, r, t)
        return jnp.sum(err_acc) / jnp.float32(b * hw)


def my_l2_loss(output, target, mask=None):
    """JAX/Pallas equivalent of MyL2Loss.forward.

    output, target: dicts with key 'flow' holding NCHW arrays (B, C, H, W).
    mask: optional (B, H, W) array.
    """
    flow = target["flow"]
    flow_pred = output["flow"]
    if mask is not None:
        return _my_l2_loss_impl(flow, flow_pred, mask, True)
    dummy = jnp.zeros((flow.shape[0], flow.shape[2], flow.shape[3]), jnp.float32)
    return _my_l2_loss_impl(flow, flow_pred, dummy, False)


# ----------------------------------------------------------------------------
# Reference + test
# ----------------------------------------------------------------------------
def _reference(output, target, mask=None):
    flow = target["flow"].astype(jnp.float32)
    flow_pred = output["flow"].astype(jnp.float32)
    err = jnp.sqrt(jnp.sum((flow - flow_pred) ** 2, axis=1))
    if mask is not None:
        err = err * mask
        return jnp.sum(err) / (jnp.sum(mask) + 1e-20)
    return jnp.mean(err)


if __name__ == "__main__":
    key = jax.random.PRNGKey(0)
    k1, k2, k3 = jax.random.split(key, 3)

    B, C, H, W = 2, 2, 16, 16  # flow has 2 channels (u, v)
    flow = jax.random.normal(k1, (B, C, H, W), dtype=jnp.float32)
    flow_pred = jax.random.normal(k2, (B, C, H, W), dtype=jnp.float32)
    mask = (jax.random.uniform(k3, (B, H, W)) > 0.5).astype(jnp.float32)

    target = {"flow": flow}
    output = {"flow": flow_pred}

    loss_masked = my_l2_loss(output, target, mask)
    loss_unmasked = my_l2_loss(output, target, None)
    jax.block_until_ready((loss_masked, loss_unmasked))

    ref_masked = _reference(output, target, mask)
    ref_unmasked = _reference(output, target, None)

    assert jnp.allclose(loss_masked, ref_masked, rtol=1e-5, atol=1e-5)
    assert jnp.allclose(loss_unmasked, ref_unmasked, rtol=1e-5, atol=1e-5)

    print("KERNEL_OK")
</pallas_src>

<mosaic_0001>
module attributes {stable_mosaic.version = 11 : i64} {
  func.func @_l2_loss_kernel_masked(%arg0: i32, %arg1: i32, %arg2: memref<1x2x8x128xf32, #tpu.memory_space<vmem>>, %arg3: memref<1x2x8x128xf32, #tpu.memory_space<vmem>>, %arg4: memref<1x8x128xf32, #tpu.memory_space<vmem>>, %arg5: memref<1x8x128xf32, #tpu.memory_space<vmem>>, %arg6: memref<1x8x128xf32, #tpu.memory_space<vmem>>) attributes {dimension_semantics = [#tpu.dimension_semantics<parallel>, #tpu.dimension_semantics<arbitrary>], iteration_bounds = array<i64: 2, 1>, scalar_prefetch = 0 : i64, scratch_operands = 0 : i64, tpu.core_type = #tpu.core_type<tc>, window_params = [{transform_indices = @transform_0, window_bounds = array<i64: 1, 2, 8, 128>}, {transform_indices = @transform_1, window_bounds = array<i64: 1, 2, 8, 128>}, {transform_indices = @transform_2, window_bounds = array<i64: 1, 8, 128>}, {transform_indices = @transform_3, window_bounds = array<i64: 1, 8, 128>}, {transform_indices = @transform_4, window_bounds = array<i64: 1, 8, 128>}]} {
    %c0_i32 = arith.constant 0 : i32
    %0 = arith.cmpi eq, %arg1, %c0_i32 : i32
    %1 = arith.extui %0 : i1 to i32
    %c0_i32_0 = arith.constant 0 : i32
    %2 = arith.cmpi ne, %1, %c0_i32_0 : i32
    scf.if %2 {
      %cst_25 = arith.constant 0.000000e+00 : f32
      %24 = vector.broadcast %cst_25 : f32 to vector<1x8x128xf32>
      %c0_26 = arith.constant 0 : index
      %c0_27 = arith.constant 0 : index
      %c0_28 = arith.constant 0 : index
      %25 = vector.load %arg5[%c0_26, %c0_27, %c0_28] : memref<1x8x128xf32, #tpu.memory_space<vmem>>, vector<1x8x128xf32>
      tpu.vector_store %arg5[%c0_26, %c0_27, %c0_28], %24 {strides = array<i32>} : memref<1x8x128xf32, #tpu.memory_space<vmem>>, vector<1x8x128xf32>,
      %cst_29 = arith.constant 0.000000e+00 : f32
      %26 = vector.broadcast %cst_29 : f32 to vector<1x8x128xf32>
      %c0_30 = arith.constant 0 : index
      %c0_31 = arith.constant 0 : index
      %c0_32 = arith.constant 0 : index
      %27 = vector.load %arg6[%c0_30, %c0_31, %c0_32] : memref<1x8x128xf32, #tpu.memory_space<vmem>>, vector<1x8x128xf32>
      tpu.vector_store %arg6[%c0_30, %c0_31, %c0_32], %26 {strides = array<i32>} : memref<1x8x128xf32, #tpu.memory_space<vmem>>, vector<1x8x128xf32>,
    } else {
    }
    %c0 = arith.constant 0 : index
    %c0_1 = arith.constant 0 : index
    %c0_2 = arith.constant 0 : index
    %c0_3 = arith.constant 0 : index
    %3 = vector.load %arg2[%c0, %c0_1, %c0_2, %c0_3] : memref<1x2x8x128xf32, #tpu.memory_space<vmem>>, vector<1x2x8x128xf32>
    %4 = vector.shape_cast %3 : vector<1x2x8x128xf32> to vector<2x8x128xf32>
    %c0_4 = arith.constant 0 : index
    %c0_5 = arith.constant 0 : index
    %c0_6 = arith.constant 0 : index
    %c0_7 = arith.constant 0 : index
    %5 = vector.load %arg3[%c0_4, %c0_5, %c0_6, %c0_7] : memref<1x2x8x128xf32, #tpu.memory_space<vmem>>, vector<1x2x8x128xf32>
    %6 = vector.shape_cast %5 : vector<1x2x8x128xf32> to vector<2x8x128xf32>
    %7 = arith.subf %4, %6 : vector<2x8x128xf32>
    %8 = arith.mulf %7, %7 : vector<2x8x128xf32>
    %cst = arith.constant dense<0.000000e+00> : vector<8x128xf32>
    %9 = vector.multi_reduction <add>, %8, %cst [0] : vector<2x8x128xf32> to vector<8x128xf32>
    %10 = math.sqrt %9 : vector<8x128xf32>
    %c0_8 = arith.constant 0 : index
    %c0_9 = arith.constant 0 : index
    %c0_10 = arith.constant 0 : index
    %11 = vector.load %arg4[%c0_8, %c0_9, %c0_10] : memref<1x8x128xf32, #tpu.memory_space<vmem>>, vector<1x8x128xf32>
    %12 = vector.shape_cast %11 : vector<1x8x128xf32> to vector<8x128xf32>
    %13 = arith.mulf %10, %12 : vector<8x128xf32>
    %c0_11 = arith.constant 0 : index
    %c0_12 = arith.constant 0 : index
    %c0_13 = arith.constant 0 : index
    %14 = vector.load %arg5[%c0_11, %c0_12, %c0_13] : memref<1x8x128xf32, #tpu.memory_space<vmem>>, vector<1x8x128xf32>
    %15 = vector.shape_cast %13 : vector<8x128xf32> to vector<1x1x8x128xf32>
    %cst_14 = arith.constant dense<0.000000e+00> : vector<1x8x128xf32>
    %16 = vector.multi_reduction <add>, %15, %cst_14 [1] : vector<1x1x8x128xf32> to vector<1x8x128xf32>
    %17 = arith.addf %14, %16 : vector<1x8x128xf32>
    %c0_15 = arith.constant 0 : index
    %c0_16 = arith.constant 0 : index
    %c0_17 = arith.constant 0 : index
    %18 = vector.load %arg5[%c0_15, %c0_16, %c0_17] : memref<1x8x128xf32, #tpu.memory_space<vmem>>, vector<1x8x128xf32>
    tpu.vector_store %arg5[%c0_15, %c0_16, %c0_17], %17 {strides = array<i32>} : memref<1x8x128xf32, #tpu.memory_space<vmem>>, vector<1x8x128xf32>,
    %c0_18 = arith.constant 0 : index
    %c0_19 = arith.constant 0 : index
    %c0_20 = arith.constant 0 : index
    %19 = vector.load %arg6[%c0_18, %c0_19, %c0_20] : memref<1x8x128xf32, #tpu.memory_space<vmem>>, vector<1x8x128xf32>
    %20 = vector.shape_cast %12 : vector<8x128xf32> to vector<1x1x8x128xf32>
    %cst_21 = arith.constant dense<0.000000e+00> : vector<1x8x128xf32>
    %21 = vector.multi_reduction <add>, %20, %cst_21 [1] : vector<1x1x8x128xf32> to vector<1x8x128xf32>
    %22 = arith.addf %19, %21 : vector<1x8x128xf32>
    %c0_22 = arith.constant 0 : index
    %c0_23 = arith.constant 0 : index
    %c0_24 = arith.constant 0 : index
    %23 = vector.load %arg6[%c0_22, %c0_23, %c0_24] : memref<1x8x128xf32, #tpu.memory_space<vmem>>, vector<1x8x128xf32>
    tpu.vector_store %arg6[%c0_22, %c0_23, %c0_24], %22 {strides = array<i32>} : memref<1x8x128xf32, #tpu.memory_space<vmem>>, vector<1x8x128xf32>,
    return
  }
  func.func @transform_0(%arg0: i32, %arg1: i32) -> (i32, i32, i32, i32) {
    %c0_i32 = arith.constant 0 : i32
    %c0_i32_0 = arith.constant 0 : i32
    %c0_i32_1 = arith.constant 0 : i32
    return %arg0, %c0_i32, %arg1, %c0_i32_0 : i32, i32, i32, i32
  }
  func.func @transform_1(%arg0: i32, %arg1: i32) -> (i32, i32, i32, i32) {
    %c0_i32 = arith.constant 0 : i32
    %c0_i32_0 = arith.constant 0 : i32
    %c0_i32_1 = arith.constant 0 : i32
    return %arg0, %c0_i32, %arg1, %c0_i32_0 : i32, i32, i32, i32
  }
  func.func @transform_2(%arg0: i32, %arg1: i32) -> (i32, i32, i32) {
    %c0_i32 = arith.constant 0 : i32
    %c0_i32_0 = arith.constant 0 : i32
    return %arg0, %arg1, %c0_i32 : i32, i32, i32
  }
  func.func @transform_3(%arg0: i32, %arg1: i32) -> (i32, i32, i32) {
    %c0_i32 = arith.constant 0 : i32
    %c0_i32_0 = arith.constant 0 : i32
    %c0_i32_1 = arith.constant 0 : i32
    return %arg0, %c0_i32, %c0_i32_0 : i32, i32, i32
  }
  func.func @transform_4(%arg0: i32, %arg1: i32) -> (i32, i32, i32) {
    %c0_i32 = arith.constant 0 : i32
    %c0_i32_0 = arith.constant 0 : i32
    %c0_i32_1 = arith.constant 0 : i32
    return %arg0, %c0_i32, %c0_i32_0 : i32, i32, i32
  }
}

</mosaic_0001>

<bundles_post_ra>
// kernel: _my_l2_loss_impl.1
= control target key start
LH: loop header
LB: loop body
LE: loop exit
PB: predicated region body
PF: predicated region fallthrough
CT: control target
= control target key end

     0   :  { %s549_s15 = smov 0   ;;  %s551_s16 = smov 0   ;;  %s596_s0 = inlined_call_operand.vmem [shape: f32[2,2,8,128], index: 0, kind: input, shape index: {}]   ;;  %s597_s1 = inlined_call_operand.vmem [shape: f32[2,2,8,128], index: 1, kind: input, shape index: {}]   ;;  %s598_s2 = inlined_call_operand.vmem [shape: f32[2,8,128], index: 2, kind: input, shape index: {}]   ;;  %s599_s3 = inlined_call_operand.vmem [shape: f32[2,8,128], index: 3, kind: output, shape index: {0}]   ;;  %s600_s4 = inlined_call_operand.vmem [shape: f32[2,8,128], index: 4, kind: output, shape index: {1}]  }
   0x1   :  { %s553_s17 = smov 0  }
   0x2 LB: > { %s27_s18 = sadd.s32 1, %s518_s16  ;;  %p461_p0 = scmp.ge.s32.totalorder %s522_s17, 1  ;;  %s522_s17 = sphi %s553_s17, %s15_s17   ;;  %s518_s16 = sphi %s551_s16, %s602_s16   ;;  %s514_s15 = sphi %s549_s15, %s601_s15  }
   0x3   : > { %p29_p1 = scmp.ge.s32.totalorder %s27_s18, 2  ;;  %p211_p2 = scmp.lt.s32.totalorder %s522_s17, 3 }
   0x5   : > { %s604_s18 = smov (%p29_p1, %s27_s18), 0  ;;  %p212_p3 = pnand %p461_p0, %p211_p2 }
   0x6   : > { %p258_p4 = scmp.lt.s32.totalorder (!%p212_p3), %s514_s15, 1 }
   0x7   : > { %215 = sbr.rel (%p212_p3) target bundleno = 47 (0x2f), region = 32 }
   0xc   : > { %s606_s15 = smov (!%p258_p4, %s514_s15), 1 }
   0xd   : > { %s471_s19 = sshll.u32 %s606_s15, 4  ;;  %s567_s20 = sshll.u32 %s606_s15, 3 }
   0xe   : > { %s265_s23 = scalar_lea.vmem %s596_s0, %s471_s19  ;;  %s273_s26 = scalar_lea.vmem %s597_s1, %s471_s19 }
   0xf   : > { %s280_s29 = scalar_lea.vmem %s598_s2, %s567_s20  ;;  %v295_v0 = vld [vmem:[%s265_s23] sm:$0xff]  ;;  %v296_v1 = vld [vmem:[%s265_s23 + $0x8] sm:$0xff]  ;;  %s288_s6 = scalar_lea.vmem %s600_s4, %s567_s20 }
  0x10   : > { %v297_v2 = vld [vmem:[%s273_s26] sm:$0xff]  ;;  %v298_v3 = vld [vmem:[%s273_s26 + $0x8] sm:$0xff]  ;;  %s284_s9 = scalar_lea.vmem %s599_s3, %s567_s20 }
  0x11   : > { %v299_v4 = vsub.f32 %v295_v0, %v297_v2  ;;  %v316_v5 = vld [vmem:[%s280_s29] sm:$0xff]  ;;  %v300_v6 = vsub.f32 %v296_v1, %v298_v3 }
  0x12   : > { %325 = vst [vmem:[%s288_s6] sm:$0xff] %v316_v5 }
  0x13   : > { %v301_v7 = vmul.f32 %v299_v4, %v299_v4  ;;  %v302_v8 = vmul.f32 %v300_v6, %v300_v6 }
  0x15   : > { %v303_v9 = vadd.f32 %v302_v8, %v301_v7 }
  0x17   : > { %498 = vrsqrt.f32 %v303_v9  ;;  %vm311_vm0 = vcmp.eq.f32.partialorder %v303_v9, inf  ;;  %v314_v16 = vand.u32 2147483648, %v303_v9  ;;  %vm313_vm1 = vcmp.eq.f32.partialorder %v303_v9, 0.0 }
  0x1d   : > { %v499_v10 = vpop.eup %498 }
  0x1e   : > { %v305_v11 = vmul.f32 %v499_v10, %v303_v9 }
  0x20   : > { %v306_v12 = vmul.f32 %v499_v10, %v305_v11 }
  0x22   : > { %v307_v13 = vmul.f32 0.5, %v306_v12 }
  0x24   : > { %v308_v14 = vsub.f32 1.5, %v307_v13 }
  0x26   : > { %v309_v15 = vmul.f32 %v499_v10, %v308_v14 }
  0x28   : > { %v310_v17 = vmul.f32 %v309_v15, %v303_v9 }
  0x2a   : > { %v312_v18 = vsel %vm311_vm0, %v303_v9, %v310_v17 }
  0x2b   : > { %v315_v19 = vsel %vm313_vm1, %v314_v16, %v312_v18 }
  0x2c   : > { %v317_v20 = vmul.f32 %v316_v5, %v315_v19 }
  0x2e   : > { %321 = vst [vmem:[%s284_s9] sm:$0xff] %v317_v20 }
  0x2f PF: > { %s15_s17 = sadd.s32 1, %s522_s17   ;;  %s601_s15 = smov %s518_s16 }
  0x30   : > { %p12_p5 = scmp.ge.s32.totalorder %s15_s17, 4   ;;  %s602_s16 = smov %s604_s18 }
  0x32   :  { %14 = sbr.rel (!%p12_p5) target bundleno = 2 (0x2), region = 84 }

</bundles_post_ra>
